<compile_context>
chip_gen: v7x
topology: tpu7x:2x2x1
jax: 0.10.0
libtpu: 0.0.40
codegen_flags: <defaults>
</compile_context>

<pallas_src>
import functools
import math

import jax
import jax.numpy as jnp
from jax import lax
from jax.experimental import pallas as pl
from jax.experimental.pallas import tpu as pltpu


# ---------------------------------------------------------------------------
# Helpers
# ---------------------------------------------------------------------------
def _cumsum_lastdim(x, col):
    """Inclusive prefix sum along the last (lane) axis via log2 rolls (XLU)."""
    n = x.shape[-1]
    ax = x.ndim - 1
    shift = 1
    y = x
    while shift < n:
        rolled = pltpu.roll(y, shift=shift, axis=ax)       # rolled[j] = y[j-shift] (wraps)
        y = y + jnp.where(col >= shift, rolled, 0.0)       # zero wrapped lanes
        shift *= 2
    return y


# ---------------------------------------------------------------------------
# FrequencyLayer: causal conv (per-tap roll + mask + bf16 matmul, accumulated)
# + high/low pass mix + residual + custom LayerNorm (eps=1e-12).
# Grid over (fused) batch; one grid step = one sequence.
# ---------------------------------------------------------------------------
def _freq_kernel(x_ref, w_ref, cb_ref, sbeta_ref, g_ref, b_ref, o_ref,
                 *, K, S, H):
    bf = jnp.bfloat16
    x = x_ref[0]                                            # (S, H) f32
    row = lax.broadcasted_iota(jnp.int32, (S, H), 0)

    low = jnp.zeros((S, H), jnp.float32)
    for k in range(K):                                      # K static & small
        s = K - 1 - k                                       # causal shift of tap k
        if s == 0:
            part = x
        else:
            rolled = pltpu.roll(x, shift=s, axis=0)         # rolled[t] = x[t-s] (wraps)
            part = jnp.where(row >= s, rolled, 0.0)         # zero wrapped rows
        low = low + jnp.dot(part.astype(bf), w_ref[k],      # bf16 MXU, f32 accum
                            preferred_element_type=jnp.float32)
    low = low + cb_ref[...]

    high = x - low
    semb = low + (sbeta_ref[...] ** 2) * high               # sqrt_beta ** 2
    h = semb + x                                            # dropout = identity

    mean = jnp.mean(h, axis=-1, keepdims=True)
    var = jnp.mean((h - mean) ** 2, axis=-1, keepdims=True)
    o_ref[0] = g_ref[...] * (h - mean) / jnp.sqrt(var + 1e-12) + b_ref[...]


def frequency_layer(x, fp):
    B, S, H = x.shape
    K = fp["wk"].shape[0]
    wk_bf = fp["wk"].astype(jnp.bfloat16)                   # (K, H, H)
    kernel = functools.partial(_freq_kernel, K=K, S=S, H=H)
    const2 = lambda b: (0, 0)
    const3 = lambda b: (0, 0, 0)
    batch = lambda b: (b, 0, 0)
    return pl.pallas_call(
        kernel,
        out_shape=jax.ShapeDtypeStruct((B, S, H), jnp.float32),
        grid=(B,),
        in_specs=[
            pl.BlockSpec((1, S, H), batch),                 # activations
            pl.BlockSpec((K, H, H), const3),                # conv taps (bf16)
            pl.BlockSpec((1, H), const2),                   # conv bias
            pl.BlockSpec((1, H), const2),                   # sqrt_beta
            pl.BlockSpec((1, H), const2),                   # LN weight
            pl.BlockSpec((1, H), const2),                   # LN bias
        ],
        out_specs=pl.BlockSpec((1, S, H), batch),
        compiler_params=pltpu.CompilerParams(
            dimension_semantics=("parallel",),
            vmem_limit_bytes=32 * 1024 * 1024),
    )(x, wk_bf, fp["cb"], fp["sqrt_beta"], fp["ln_w"], fp["ln_b"])


# ---------------------------------------------------------------------------
# Fully fused TransformerLayer kernel (one grid step = one batch element):
#   shared q/k projection (kq_same & query==key) -> v projection -> per-head
#   AKT attention (masked softmax, roll-based cumulative distance effect,
#   exp decay, masked softmax, zero_pad) -> per-head accumulated out_proj ->
#   residual + LN1 -> [FFN -> residual + LN2].
# Causal mask built from iotas; gamma = -softplus(gammas) read from SMEM.
# ---------------------------------------------------------------------------
def _block_kernel(gamma_ref, x_ref, v_ref,
                  wk_ref, bk_ref, wv_ref, bv_ref, wo_ref, bo_ref,
                  ln1w_ref, ln1b_ref, *rest,
                  n_heads, d_k, S, mask_k, zero_pad, apply_pos):
    if apply_pos:
        w1_ref, b1_ref, w2_ref, b2_ref, ln2w_ref, ln2b_ref, o_ref = rest
    else:
        (o_ref,) = rest

    bf = jnp.bfloat16
    D = n_heads * d_k
    x = x_ref[0]                                            # (S, D) query == key (f32)
    v_in = v_ref[0]                                         # (S, D) values

    # kq_same=True and query is key at every call site -> single shared proj.
    kq = jnp.dot(x.astype(bf), wk_ref[...],
                 preferred_element_type=jnp.float32) + bk_ref[...]
    vv = jnp.dot(v_in.astype(bf), wv_ref[...],
                 preferred_element_type=jnp.float32) + bv_ref[...]

    row = lax.broadcasted_iota(jnp.int32, (S, S), 0)        # query index i
    col = lax.broadcasted_iota(jnp.int32, (S, S), 1)        # key   index j
    mask = col < row + mask_k                               # triu(ones,k=mask_k)==0
    neg = jnp.float32(-1e32)
    pos_eff = jnp.abs(col - row).astype(jnp.float32)
    not_first = (row >= 1).astype(jnp.float32)
    scale = 1.0 / math.sqrt(d_k)

    attn = jnp.zeros((S, D), jnp.float32)                   # accumulated out-proj
    for h in range(n_heads):                                # static unroll
        lo = h * d_k
        qh = kq[:, lo:lo + d_k].astype(bf)                  # q == k per head
        vh = vv[:, lo:lo + d_k].astype(bf)
        gamma = gamma_ref[h]                                # scalar = -softplus(gamma_h)

        scores = lax.dot_general(qh, qh, (((1,), (1,)), ((), ())),
                                 preferred_element_type=jnp.float32) * scale

        # --- "no_grad" distance block (f32) ---
        sm = jnp.where(mask, scores, neg)
        sm = sm - jnp.max(sm, axis=-1, keepdims=True)
        e = jnp.exp(sm)
        p = e / jnp.sum(e, axis=-1, keepdims=True)
        # masked entries of p are exp(-1e32)=0; the row-0/mask_k=0 corner is
        # killed by zero_pad below, so the explicit p*mask select is dropped.
        distcum = _cumsum_lastdim(p, col)                   # XLU prefix sum
        disttotal = jnp.sum(p, axis=-1, keepdims=True)
        dist = jnp.sqrt(jnp.maximum((disttotal - distcum) * pos_eff, 0.0))
        total_effect = jnp.maximum(jnp.exp(dist * gamma), 1e-5)  # gamma<=0 => <=1

        # --- final masked softmax (f32) ---
        s2 = jnp.where(mask, scores * total_effect, neg)
        s2 = s2 - jnp.max(s2, axis=-1, keepdims=True)
        e2 = jnp.exp(s2)
        p2 = e2 * pl.reciprocal(jnp.sum(e2, axis=-1, keepdims=True), approx=True)
        if zero_pad:                                        # zero first query row
            p2 = p2 * not_first
        # dropout = identity at inference

        head_out = jnp.dot(p2.astype(bf), vh,
                           preferred_element_type=jnp.float32)      # (S, d_k)
        attn = attn + jnp.dot(head_out.astype(bf), wo_ref[h],
                              preferred_element_type=jnp.float32)   # (S, D) lane-dense

    attn = attn + bo_ref[...]

    # residual + LayerNorm1 (nn.LayerNorm, eps=1e-5)
    h1 = x + attn
    mean = jnp.mean(h1, axis=-1, keepdims=True)
    var = jnp.mean((h1 - mean) ** 2, axis=-1, keepdims=True)
    h1 = ln1w_ref[...] * (h1 - mean) / jnp.sqrt(var + 1e-5) + ln1b_ref[...]

    if apply_pos:
        ff = jnp.dot(h1.astype(bf), w1_ref[...],
                     preferred_element_type=jnp.float32) + b1_ref[...]
        ff = jnp.maximum(ff, 0.0)                           # ReLU
        ff = jnp.dot(ff.astype(bf), w2_ref[...],
                     preferred_element_type=jnp.float32) + b2_ref[...]
        h2 = h1 + ff                                        # residual
        mean = jnp.mean(h2, axis=-1, keepdims=True)
        var = jnp.mean((h2 - mean) ** 2, axis=-1, keepdims=True)
        h1 = ln2w_ref[...] * (h2 - mean) / jnp.sqrt(var + 1e-5) + ln2b_ref[...]

    o_ref[0] = h1


def transformer_layer(mask_k, query_key, values, p, apply_pos, n_heads):
    # query == key at every Framework call site (and kq_same=True), so the
    # query/key projection is computed once inside the fused kernel.
    bs, S, D = query_key.shape
    d_k = D // n_heads
    zero_pad = (mask_k == 0)
    bf = jnp.bfloat16

    neg_sp_gamma = (-jax.nn.softplus(p["gammas"])).astype(jnp.float32)  # (n_heads,)
    wk_bf = p["Wk"].astype(bf)
    wv_bf = p["Wv"].astype(bf)
    wo_bf = p["Wo"].reshape(n_heads, d_k, D).astype(bf)     # head-sliced out-proj

    const2 = lambda b: (0, 0)
    const3 = lambda b: (0, 0, 0)
    batch = lambda b: (b, 0, 0)

    in_specs = [
        pl.BlockSpec(memory_space=pltpu.MemorySpace.SMEM),              # -softplus(gammas)
        pl.BlockSpec((1, S, D), batch),                                 # query == key
        pl.BlockSpec((1, S, D), batch),                                 # values
        pl.BlockSpec((D, D), const2), pl.BlockSpec((1, D), const2),     # Wk, bk
        pl.BlockSpec((D, D), const2), pl.BlockSpec((1, D), const2),     # Wv, bv
        pl.BlockSpec((n_heads, d_k, D), const3),                        # Wo (head-sliced)
        pl.BlockSpec((1, D), const2),                                   # bo
        pl.BlockSpec((1, D), const2), pl.BlockSpec((1, D), const2),     # ln1 w, b
    ]
    args = [neg_sp_gamma, query_key, values,
            wk_bf, p["bk"].reshape(1, D), wv_bf, p["bv"].reshape(1, D),
            wo_bf, p["bo"].reshape(1, D),
            p["ln1_w"].reshape(1, D), p["ln1_b"].reshape(1, D)]

    if apply_pos:                                           # FFN weights only when used
        d_ff = p["W1"].shape[1]
        in_specs += [
            pl.BlockSpec((D, d_ff), const2), pl.BlockSpec((1, d_ff), const2),  # W1, b1
            pl.BlockSpec((d_ff, D), const2), pl.BlockSpec((1, D), const2),     # W2, b2
            pl.BlockSpec((1, D), const2), pl.BlockSpec((1, D), const2),        # ln2 w, b
        ]
        args += [p["W1"].astype(bf), p["b1"].reshape(1, d_ff),
                 p["W2"].astype(bf), p["b2"].reshape(1, D),
                 p["ln2_w"].reshape(1, D), p["ln2_b"].reshape(1, D)]

    kernel = functools.partial(
        _block_kernel, n_heads=n_heads, d_k=d_k, S=S,
        mask_k=mask_k, zero_pad=zero_pad, apply_pos=apply_pos)

    return pl.pallas_call(
        kernel,
        out_shape=jax.ShapeDtypeStruct((bs, S, D), jnp.float32),
        grid=(bs,),
        in_specs=in_specs,
        out_specs=pl.BlockSpec((1, S, D), batch),
        compiler_params=pltpu.CompilerParams(
            dimension_semantics=("parallel",),
            vmem_limit_bytes=32 * 1024 * 1024),
    )(*args)


# ---------------------------------------------------------------------------
# Module-level glue (plain JAX): block wiring of Framework.forward
# ---------------------------------------------------------------------------
def framework_forward(params, q_embed_data, qa_embed_data, pid_embed_data,
                      n_heads):
    # emb_type = 'qid_conv': 'conv' in emb_type -> FrequencyLayer applied.
    # 'pdiff' not in emb_type -> pid_embed_data (pdiff) is unused in attention.
    del pid_embed_data
    B = q_embed_data.shape[0]

    # Fuse the two FrequencyLayer calls (shared weights) into one pallas_call.
    xy = jnp.concatenate([q_embed_data, qa_embed_data], axis=0)
    xy = frequency_layer(xy, params["filter"])
    x, y = xy[:B], xy[B:]

    for p in params["blocks_1"]:
        # mask=1, query=key=values=y, apply_pos=True
        y = transformer_layer(1, y, y, p, apply_pos=True, n_heads=n_heads)

    flag_first = True
    for p in params["blocks_2"]:
        if flag_first:
            # mask=1, query=key=values=x, apply_pos=False
            x = transformer_layer(1, x, x, p, apply_pos=False, n_heads=n_heads)
            flag_first = False
        else:
            # mask=0, query=key=x, values=y, apply_pos=True
            x = transformer_layer(0, x, y, p, apply_pos=True, n_heads=n_heads)
            flag_first = True
    return x


# ---------------------------------------------------------------------------
# Parameter initialization (random, deterministic)
# ---------------------------------------------------------------------------
def init_transformer_layer_params(key, d_model, d_ff, n_heads):
    ks = jax.random.split(key, 8)
    s = 1.0 / math.sqrt(d_model)
    sf = 1.0 / math.sqrt(d_ff)
    return {
        "Wk": jax.random.uniform(ks[0], (d_model, d_model), jnp.float32, -s, s),
        "bk": jnp.zeros((d_model,), jnp.float32),
        "Wv": jax.random.uniform(ks[1], (d_model, d_model), jnp.float32, -s, s),
        "bv": jnp.zeros((d_model,), jnp.float32),
        "Wo": jax.random.uniform(ks[2], (d_model, d_model), jnp.float32, -s, s),
        "bo": jnp.zeros((d_model,), jnp.float32),
        "gammas": jax.random.uniform(ks[3], (n_heads,), jnp.float32, -1.0, 1.0),
        "ln1_w": jnp.ones((d_model,), jnp.float32),
        "ln1_b": jnp.zeros((d_model,), jnp.float32),
        "W1": jax.random.uniform(ks[4], (d_model, d_ff), jnp.float32, -s, s),
        "b1": jax.random.uniform(ks[5], (d_ff,), jnp.float32, -s, s),
        "W2": jax.random.uniform(ks[6], (d_ff, d_model), jnp.float32, -sf, sf),
        "b2": jax.random.uniform(ks[7], (d_model,), jnp.float32, -sf, sf),
        "ln2_w": jnp.ones((d_model,), jnp.float32),
        "ln2_b": jnp.zeros((d_model,), jnp.float32),
    }


def init_params(key, d_model, d_ff, n_heads, kernel_size, n_blocks):
    kf, kb1, kb2 = jax.random.split(key, 3)
    kfs = jax.random.split(kf, 3)
    s = 1.0 / math.sqrt(d_model * kernel_size)
    filter_p = {
        # wk[k, c, o] corresponds to torch conv.weight[o, c, k]
        "wk": jax.random.uniform(kfs[0], (kernel_size, d_model, d_model),
                                 jnp.float32, -s, s),
        "cb": jax.random.uniform(kfs[1], (1, d_model), jnp.float32, -s, s),
        "sqrt_beta": jax.random.normal(kfs[2], (1, d_model), jnp.float32),
        "ln_w": jnp.ones((1, d_model), jnp.float32),
        "ln_b": jnp.zeros((1, d_model), jnp.float32),
    }
    blocks_1 = [init_transformer_layer_params(k, d_model, d_ff, n_heads)
                for k in jax.random.split(kb1, n_blocks)]
    blocks_2 = [init_transformer_layer_params(k, d_model, d_ff, n_heads)
                for k in jax.random.split(kb2, 2 * n_blocks)]
    return {"filter": filter_p, "blocks_1": blocks_1, "blocks_2": blocks_2}


if __name__ == "__main__":
    B, S, D, H, FF, K, NB = 2, 8, 32, 4, 64, 3, 1   # d_feature = D // H = 8
    key = jax.random.PRNGKey(0)
    kp, kq, ka, kpid = jax.random.split(key, 4)

    params = init_params(kp, D, FF, H, K, NB)
    q_embed_data = jax.random.normal(kq, (B, S, D), jnp.float32)
    qa_embed_data = jax.random.normal(ka, (B, S, D), jnp.float32)
    pid_embed_data = jax.random.normal(kpid, (B, S, S), jnp.float32)  # unused (no 'pdiff')

    out = framework_forward(params, q_embed_data, qa_embed_data,
                            pid_embed_data, n_heads=H)
    out = jax.block_until_ready(out)

    assert out.shape == (B, S, D), out.shape
    assert bool(jnp.all(jnp.isfinite(out)))
    print("KERNEL_OK")
</pallas_src>

<mosaic_0001>
module attributes {stable_mosaic.version = 11 : i64} {
  func.func @_freq_kernel(%arg0: i32, %arg1: memref<1x8x32xf32, #tpu.memory_space<vmem>>, %arg2: memref<3x32x32xbf16, #tpu.memory_space<vmem>>, %arg3: memref<1x32xf32, #tpu.memory_space<vmem>>, %arg4: memref<1x32xf32, #tpu.memory_space<vmem>>, %arg5: memref<1x32xf32, #tpu.memory_space<vmem>>, %arg6: memref<1x32xf32, #tpu.memory_space<vmem>>, %arg7: memref<1x8x32xf32, #tpu.memory_space<vmem>>) attributes {dimension_semantics = [#tpu.dimension_semantics<parallel>], iteration_bounds = array<i64: 4>, scalar_prefetch = 0 : i64, scratch_operands = 0 : i64, tpu.core_type = #tpu.core_type<tc>, window_params = [{transform_indices = @transform_0, window_bounds = array<i64: 1, 8, 32>}, {pipeline_mode = #tpu.pipeline_mode<synchronous>, transform_indices = @transform_1, window_bounds = array<i64: 3, 32, 32>}, {pipeline_mode = #tpu.pipeline_mode<synchronous>, transform_indices = @transform_2, window_bounds = array<i64: 1, 32>}, {pipeline_mode = #tpu.pipeline_mode<synchronous>, transform_indices = @transform_3, window_bounds = array<i64: 1, 32>}, {pipeline_mode = #tpu.pipeline_mode<synchronous>, transform_indices = @transform_4, window_bounds = array<i64: 1, 32>}, {pipeline_mode = #tpu.pipeline_mode<synchronous>, transform_indices = @transform_5, window_bounds = array<i64: 1, 32>}, {transform_indices = @transform_6, window_bounds = array<i64: 1, 8, 32>}]} {
    %c0 = arith.constant 0 : index
    %c0_0 = arith.constant 0 : index
    %c0_1 = arith.constant 0 : index
    %0 = vector.load %arg1[%c0, %c0_0, %c0_1] : memref<1x8x32xf32, #tpu.memory_space<vmem>>, vector<1x8x32xf32>
    %1 = vector.shape_cast %0 : vector<1x8x32xf32> to vector<8x32xf32>
    %2 = tpu.iota {dimensions = array<i32: 0>} : vector<8x32xi32>
    %cst = arith.constant 0.000000e+00 : f32
    %3 = vector.broadcast %cst : f32 to vector<8x32xf32>
    %c2_i32 = arith.constant 2 : i32
    %4 = tpu.dynamic_rotate %1 by %c2_i32 dim 0 : vector<8x32xf32>, i32 -> vector<8x32xf32>
    %c2_i32_2 = arith.constant 2 : i32
    %5 = vector.broadcast %c2_i32_2 : i32 to vector<8x32xi32>
    %6 = arith.cmpi sge, %2, %5 : vector<8x32xi32>
    %cst_3 = arith.constant 0.000000e+00 : f32
    %7 = vector.broadcast %cst_3 : f32 to vector<8x32xf32>
    %8 = arith.select %6, %4, %7 : vector<8x32xi1>, vector<8x32xf32>
    %9 = arith.truncf %8 : vector<8x32xf32> to vector<8x32xbf16>
    %c0_4 = arith.constant 0 : index
    %c0_5 = arith.constant 0 : index
    %c0_6 = arith.constant 0 : index
    %10 = vector.load %arg2[%c0_4, %c0_5, %c0_6] : memref<3x32x32xbf16, #tpu.memory_space<vmem>>, vector<1x32x32xbf16>
    %11 = vector.shape_cast %10 : vector<1x32x32xbf16> to vector<32x32xbf16>
    %cst_7 = arith.constant dense<0.000000e+00> : vector<8x32xf32>
    %12 = tpu.matmul %9, %11, %cst_7 {dimension_numbers = #tpu.dot_dimension_numbers<[1], [0], [0], [1], [0, 0, 1, 1], [], []>} : vector<8x32xbf16>, vector<32x32xbf16>, vector<8x32xf32> -> vector<8x32xf32>
    %13 = arith.addf %3, %12 : vector<8x32xf32>
    %c1_i32 = arith.constant 1 : i32
    %14 = tpu.dynamic_rotate %1 by %c1_i32 dim 0 : vector<8x32xf32>, i32 -> vector<8x32xf32>
    %c1_i32_8 = arith.constant 1 : i32
    %15 = vector.broadcast %c1_i32_8 : i32 to vector<8x32xi32>
    %16 = arith.cmpi sge, %2, %15 : vector<8x32xi32>
    %cst_9 = arith.constant 0.000000e+00 : f32
    %17 = vector.broadcast %cst_9 : f32 to vector<8x32xf32>
    %18 = arith.select %16, %14, %17 : vector<8x32xi1>, vector<8x32xf32>
    %19 = arith.truncf %18 : vector<8x32xf32> to vector<8x32xbf16>
    %c1 = arith.constant 1 : index
    %c0_10 = arith.constant 0 : index
    %c0_11 = arith.constant 0 : index
    %20 = vector.load %arg2[%c1, %c0_10, %c0_11] : memref<3x32x32xbf16, #tpu.memory_space<vmem>>, vector<1x32x32xbf16>
    %21 = vector.shape_cast %20 : vector<1x32x32xbf16> to vector<32x32xbf16>
    %cst_12 = arith.constant dense<0.000000e+00> : vector<8x32xf32>
    %22 = tpu.matmul %19, %21, %cst_12 {dimension_numbers = #tpu.dot_dimension_numbers<[1], [0], [0], [1], [0, 0, 1, 1], [], []>} : vector<8x32xbf16>, vector<32x32xbf16>, vector<8x32xf32> -> vector<8x32xf32>
    %23 = arith.addf %13, %22 : vector<8x32xf32>
    %24 = arith.truncf %1 : vector<8x32xf32> to vector<8x32xbf16>
    %c2 = arith.constant 2 : index
    %c0_13 = arith.constant 0 : index
    %c0_14 = arith.constant 0 : index
    %25 = vector.load %arg2[%c2, %c0_13, %c0_14] : memref<3x32x32xbf16, #tpu.memory_space<vmem>>, vector<1x32x32xbf16>
    %26 = vector.shape_cast %25 : vector<1x32x32xbf16> to vector<32x32xbf16>
    %cst_15 = arith.constant dense<0.000000e+00> : vector<8x32xf32>
    %27 = tpu.matmul %24, %26, %cst_15 {dimension_numbers = #tpu.dot_dimension_numbers<[1], [0], [0], [1], [0, 0, 1, 1], [], []>} : vector<8x32xbf16>, vector<32x32xbf16>, vector<8x32xf32> -> vector<8x32xf32>
    %28 = arith.addf %23, %27 : vector<8x32xf32>
    %c0_16 = arith.constant 0 : index
    %c0_17 = arith.constant 0 : index
    %29 = vector.load %arg3[%c0_16, %c0_17] : memref<1x32xf32, #tpu.memory_space<vmem>>, vector<1x32xf32>
    %30 = vector.broadcast %29 : vector<1x32xf32> to vector<8x32xf32>
    %31 = arith.addf %28, %30 : vector<8x32xf32>
    %32 = arith.subf %1, %31 : vector<8x32xf32>
    %c0_18 = arith.constant 0 : index
    %c0_19 = arith.constant 0 : index
    %33 = vector.load %arg4[%c0_18, %c0_19] : memref<1x32xf32, #tpu.memory_space<vmem>>, vector<1x32xf32>
    %34 = arith.mulf %33, %33 : vector<1x32xf32>
    %35 = vector.broadcast %34 : vector<1x32xf32> to vector<8x32xf32>
    %36 = arith.mulf %35, %32 : vector<8x32xf32>
    %37 = arith.addf %31, %36 : vector<8x32xf32>
    %38 = arith.addf %37, %1 : vector<8x32xf32>
    %cst_20 = arith.constant dense<0.000000e+00> : vector<8xf32>
    %39 = vector.multi_reduction <add>, %38, %cst_20 [1] : vector<8x32xf32> to vector<8xf32>
    %40 = vector.shape_cast %39 : vector<8xf32> to vector<8x1xf32>
    %cst_21 = arith.constant 3.200000e+01 : f32
    %41 = vector.broadcast %cst_21 : f32 to vector<8x1xf32>
    %42 = arith.divf %40, %41 : vector<8x1xf32>
    %43 = vector.broadcast %42 : vector<8x1xf32> to vector<8x32xf32>
    %44 = arith.subf %38, %43 : vector<8x32xf32>
    %45 = arith.mulf %44, %44 : vector<8x32xf32>
    %cst_22 = arith.constant dense<0.000000e+00> : vector<8xf32>
    %46 = vector.multi_reduction <add>, %45, %cst_22 [1] : vector<8x32xf32> to vector<8xf32>
    %47 = vector.shape_cast %46 : vector<8xf32> to vector<8x1xf32>
    %cst_23 = arith.constant 3.200000e+01 : f32
    %48 = vector.broadcast %cst_23 : f32 to vector<8x1xf32>
    %49 = arith.divf %47, %48 : vector<8x1xf32>
    %c0_24 = arith.constant 0 : index
    %c0_25 = arith.constant 0 : index
    %50 = vector.load %arg5[%c0_24, %c0_25] : memref<1x32xf32, #tpu.memory_space<vmem>>, vector<1x32xf32>
    %51 = vector.broadcast %42 : vector<8x1xf32> to vector<8x32xf32>
    %52 = arith.subf %38, %51 : vector<8x32xf32>
    %53 = vector.broadcast %50 : vector<1x32xf32> to vector<8x32xf32>
    %54 = arith.mulf %53, %52 : vector<8x32xf32>
    %cst_26 = arith.constant 9.99999996E-13 : f32
    %55 = vector.broadcast %cst_26 : f32 to vector<8x1xf32>
    %56 = arith.addf %49, %55 : vector<8x1xf32>
    %57 = math.sqrt %56 : vector<8x1xf32>
    %58 = vector.broadcast %57 : vector<8x1xf32> to vector<8x32xf32>
    %59 = arith.divf %54, %58 : vector<8x32xf32>
    %c0_27 = arith.constant 0 : index
    %c0_28 = arith.constant 0 : index
    %60 = vector.load %arg6[%c0_27, %c0_28] : memref<1x32xf32, #tpu.memory_space<vmem>>, vector<1x32xf32>
    %61 = vector.broadcast %60 : vector<1x32xf32> to vector<8x32xf32>
    %62 = arith.addf %59, %61 : vector<8x32xf32>
    %c0_29 = arith.constant 0 : index
    %c0_30 = arith.constant 0 : index
    %c0_31 = arith.constant 0 : index
    %63 = vector.load %arg7[%c0_29, %c0_30, %c0_31] : memref<1x8x32xf32, #tpu.memory_space<vmem>>, vector<1x8x32xf32>
    %64 = vector.shape_cast %63 : vector<1x8x32xf32> to vector<8x32xf32>
    %65 = vector.shape_cast %62 : vector<8x32xf32> to vector<1x8x32xf32>
    tpu.vector_store %arg7[%c0_29, %c0_30, %c0_31], %65 {strides = array<i32>} : memref<1x8x32xf32, #tpu.memory_space<vmem>>, vector<1x8x32xf32>,
    return
  }
  func.func @transform_0(%arg0: i32) -> (i32, i32, i32) {
    %c0_i32 = arith.constant 0 : i32
    %c0_i32_0 = arith.constant 0 : i32
    %c0_i32_1 = arith.constant 0 : i32
    return %arg0, %c0_i32, %c0_i32_0 : i32, i32, i32
  }
  func.func @transform_1(%arg0: i32) -> (i32, i32, i32) {
    %c0_i32 = arith.constant 0 : i32
    %c0_i32_0 = arith.constant 0 : i32
    %c0_i32_1 = arith.constant 0 : i32
    %c0_i32_2 = arith.constant 0 : i32
    return %c0_i32, %c0_i32_0, %c0_i32_1 : i32, i32, i32
  }
  func.func @transform_2(%arg0: i32) -> (i32, i32) {
    %c0_i32 = arith.constant 0 : i32
    %c0_i32_0 = arith.constant 0 : i32
    %c0_i32_1 = arith.constant 0 : i32
    return %c0_i32, %c0_i32_0 : i32, i32
  }
  func.func @transform_3(%arg0: i32) -> (i32, i32) {
    %c0_i32 = arith.constant 0 : i32
    %c0_i32_0 = arith.constant 0 : i32
    %c0_i32_1 = arith.constant 0 : i32
    return %c0_i32, %c0_i32_0 : i32, i32
  }
  func.func @transform_4(%arg0: i32) -> (i32, i32) {
    %c0_i32 = arith.constant 0 : i32
    %c0_i32_0 = arith.constant 0 : i32
    %c0_i32_1 = arith.constant 0 : i32
    return %c0_i32, %c0_i32_0 : i32, i32
  }
  func.func @transform_5(%arg0: i32) -> (i32, i32) {
    %c0_i32 = arith.constant 0 : i32
    %c0_i32_0 = arith.constant 0 : i32
    %c0_i32_1 = arith.constant 0 : i32
    return %c0_i32, %c0_i32_0 : i32, i32
  }
  func.func @transform_6(%arg0: i32) -> (i32, i32, i32) {
    %c0_i32 = arith.constant 0 : i32
    %c0_i32_0 = arith.constant 0 : i32
    %c0_i32_1 = arith.constant 0 : i32
    return %arg0, %c0_i32, %c0_i32_0 : i32, i32, i32
  }
}

</mosaic_0001>

<bundles_post_ra>
// kernel: tpu_custom_call.1
= control target key start
LH: loop header
LB: loop body
LE: loop exit
PB: predicated region body
PF: predicated region fallthrough
CT: control target
= control target key end

     0   :  { %11 = vsyncpa [#allocation3], 0  ;;  %s1142_s0 = inlined_call_operand.hbm [shape: f32[4,8,32], index: 0, kind: input, shape index: {}]   ;;  %s1143_s1 = inlined_call_operand.hbm [shape: bf16[3,32,32], index: 1, kind: input, shape index: {}]   ;;  %s1144_s2 = inlined_call_operand.vmem [shape: f32[1,32], index: 2, kind: input, shape index: {}]   ;;  %s1145_s3 = inlined_call_operand.vmem [shape: f32[1,32], index: 3, kind: input, shape index: {}]   ;;  %s1146_s4 = inlined_call_operand.vmem [shape: f32[1,32], index: 4, kind: input, shape index: {}]   ;;  %s1147_s5 = inlined_call_operand.vmem [shape: f32[1,32], index: 5, kind: input, shape index: {}]   ;;  %s1148_s6 = inlined_call_operand.hbm [shape: f32[4,8,32], index: 6, kind: output, shape index: {}]  }
   0x1   :  { %13 = vsyncpa [#allocation3 + $0x1], 0 }
   0x2   :  { %14 = vsyncpa [#allocation6], 0 }
   0x3   :  { %15 = vsyncpa [#allocation4], 0 }
   0x4   :  { %17 = vsyncpa [#allocation4 + $0x1], 0  ;;  %s930_s21 = smov 0   ;;  %s932_s22 = smov 0  }
   0x5   :  { %s934_s23 = smov 0   ;;  %s936_s24 = smov 0  }
   0x6 LB: > { %s951_s25 = sadd.s32 4294967295, %s886_s24   ;;  %s628_s26 = sadd.s32 4294967294, %s886_s24   ;;  %s886_s24 = sphi %s936_s24, %s1167_s24   ;;  %s882_s23 = sphi %s934_s23, %s1166_s23   ;;  %s878_s22 = sphi %s932_s22, %s1165_s22   ;;  %s874_s21 = sphi %s930_s21, %s1164_s21  }
   0x7   : > { %p43_p0 = scmp.ne.s32.totalorder %s878_s22, %s874_s21  ;;  %p1149_p1 = scmp.eq.s32.totalorder %s951_s25, 0 }
   0x8   : > { %p178_p3 = scmp.eq.s32.totalorder %s628_s26, 3  ;;  %p629_p5 = scmp.ge.s32.totalorder %s886_s24, 1 }
   0x9   : > { %p960_p4 = por %p1149_p1, %p43_p0  ;;  %p185_p7 = scmp.lt.s32.totalorder %s886_s24, 5 }
   0xa   : > { %p965_p6 = por %p178_p3, %p43_p0  ;;  %s888_s30 = smov [#allocation5]  }
   0xb   : > { %s1152_s27 = scalar_select %p960_p4, 1, 0 }
   0xc   : > { %s1153_s28 = scalar_select %p965_p6, 1, 0 }
   0xd   : > { %p970_p8 = pnand %p629_p5, %p185_p7  ;;  %s197_s7 = sshll.u32 %s888_s30, 4  ;;  %s198_s7 = int_to_ptr.vmem [resolvable:$true] %s197_s7 }
   0xe   : > { %s983_s9 = sadd.s32 1, %s886_s24   ;;  %s30_s10 = sadd.s32 1, %s882_s23 }
   0xf   : > { %s1154_s29 = scalar_select %p970_p8, 1, 0 }
  0x10   : > { %p695_p9 = pneg %p970_p8  ;;  %s27_s11 = ssub.s32 %s886_s24, %s983_s9 }
  0x11   : > { %s758_s14 = scalar_lea.hbm %s1143_s1, 768 }
  0x12   : > { %p978_p10 = pnand %p695_p9, %p1149_p1  ;;  %p759_p11 = scmp.ne.s32.totalorder %s1143_s1, %s758_s14 }
  0x13   : > { %p765_p3 = scmp.lt.u32.totalorder %s758_s14, %s1143_s1 }
  0x14   : > { %p760_p12 = pneg %p978_p10 }
  0x16   : > { %p761_p13 = pnand %p760_p12, %p759_p11 }
  0x18   : > { %p762_p0 = pneg %p761_p13 }
  0x1a   : > { %p767_p5 = pnand %p765_p3, %p762_p0 }
  0x1c   : > { %770 = shalt.err (!%p767_p5)
}
  0x1d   : > { %s771_s19 = scalar_lea.vmem %s198_s7, 768  ;;  %p779_p2 = scmp.lt.s32.totalorder %s198_s7, %s198_s7 }
  0x1e   : > { %p772_p7 = scmp.ne.s32.totalorder %s198_s7, %s771_s19  ;;  %p780_p6 = scmp.lt.s32.totalorder %s771_s19, %s771_s19 }
  0x20   : > { %p774_p9 = pnand %p772_p7, %p760_p12  ;;  %p781_p4 = por %p780_p6, %p779_p2 }
  0x22   : > { %p775_p1 = pneg %p774_p9 }
  0x24   : > { %p782_p8 = pnand %p781_p4, %p775_p1 }
  0x26   : > { %785 = shalt.err (!%p782_p8)
}
  0x27   : > { %s889_s20 = smov 64   ;;  %s890_s26 = smov 4  }
  0x28   : > { %698 = dma.hbm_to_vmem [thread:$0]  (!%p978_p10), %s1143_s1, 768, %s198_s7, [#allocation6], %s889_s20, %s889_s20, %s890_s26  }
  0x29   : > { %p28_p11 = scmp.eq.s32.totalorder %s27_s11, 0  ;;  %p37_p2 = scmp.ne.s32.totalorder %s882_s23, %s878_s22 }
  0x2a   : > { %p38_p1 = scmp.eq.s32.totalorder %s886_s24, 0  ;;  %p708_p4 = scmp.lt.s32.totalorder %s886_s24, 4 }
  0x2b   : > { %s1009_s13 = scalar_select %p28_p11, %s882_s23, %s30_s10  }
  0x2c   : > { %p39_p6 = por %p38_p1, %p37_p2  ;;  %p1156_p8 = scmp.eq.s32.totalorder %s951_s25, 3 }
  0x2d   : > { %s223_s15 = sand.u32 1, %s882_s23   ;;  %s633_s16 = sshll.u32 %s886_s24, 7 }
  0x2e   : > { %p1013_p12 = por %p1156_p8, %p37_p2  ;;  %s632_s17 = sshll.u32 %s223_s15, 3 }
  0x2f   : > { %s1022_s19 = scalar_lea.hbm %s1142_s0, %s633_s16  ;;  %s227_s7 = scalar_lea.vmem [#allocation2], %s632_s17 }
  0x30   : > { %s234_s10 = sshll.u32 %s227_s7, 4  ;;  %p1024_p10 = pnand %p708_p4, %p39_p6  ;;  %s1028_s10 = int_to_ptr.vmem [resolvable:$true] %s234_s10 }
  0x31   : > { %s224_s20 = scalar_lea.sflag [#allocation3], %s223_s15  ;;  %s786_s26 = scalar_lea.hbm %s1022_s19, 128 }
  0x32   : > { %p787_p13 = scmp.ne.s32.totalorder %s1022_s19, %s786_s26  ;;  %p788_p0 = pneg %p1024_p10 }
  0x33   : > { %s791_s16 = scalar_lea.hbm %s1142_s0, 512  ;;  %p792_p7 = scmp.lt.u32.totalorder %s1022_s19, %s1142_s0 }
  0x34   : > { %p789_p3 = pnand %p788_p0, %p787_p13  ;;  %p793_p9 = scmp.lt.u32.totalorder %s791_s16, %s786_s26 }
  0x35   : > { %p795_p2 = scmp.lt.u32.totalorder %s786_s26, %s1022_s19 }
  0x36   : > { %p790_p5 = pneg %p789_p3  ;;  %p794_p11 = por %p793_p9, %p792_p7 }
  0x38   : > { %p796_p1 = por %p795_p2, %p794_p11 }
  0x3a   : > { %p797_p4 = pnand %p796_p1, %p790_p5 }
  0x3c   : > { %800 = shalt.err (!%p797_p4)
}
  0x3d   : > { %s801_s15 = scalar_lea.vmem %s1028_s10, 128  ;;  %s891_s18 = smov [#allocation2]  }
  0x3e   : > { %p802_p6 = scmp.ne.s32.totalorder %s1028_s10, %s801_s15  ;;  %s806_s7 = sshll.u32 %s891_s18, 4  ;;  %s807_s7 = int_to_ptr.vmem [resolvable:$false] %s806_s7 }
  0x3f   : > { %s808_s30 = scalar_lea.vmem %s807_s7, 256  ;;  %p809_p3 = scmp.lt.s32.totalorder %s1028_s10, %s807_s7 }
  0x40   : > { %p804_p8 = pnand %p802_p6, %p788_p0  ;;  %p810_p7 = scmp.lt.s32.totalorder %s808_s30, %s801_s15 }
  0x42   : > { %p805_p13 = pneg %p804_p8  ;;  %p811_p9 = por %p810_p7, %p809_p3 }
  0x44   : > { %p812_p11 = pnand %p811_p9, %p805_p13 }
  0x46   : > { %815 = shalt.err (!%p812_p11)
}
  0x47   : > { %702 = dma.hbm_to_vmem [thread:$0]  (!%p1024_p10), %s1022_s19, 128, %s1028_s10, %s224_s20  }
  0x48   : > { %p1159_p5 = scmp.ne.s32.totalorder %s1154_s29, 0 }
  0x49   : > { %s1058_s26 = sand.u32 (!%p1159_p5), 1, %s878_s22   ;;  %p1160_p0 = scmp.ne.s32.totalorder (!%p1159_p5), %s1152_s27, 0 }
  0x4a   : > { %243 = sbr.rel (%p1159_p5) target bundleno = 667 (0x29b), region = 44  ;;  %s635_s12 = sshll.u32 (!%p1159_p5), %s1058_s26, 3 }
  0x4b   : > { %s246_s16 = scalar_lea.sflag (!%p1159_p5), [#allocation3], %s1058_s26  ;;  %s249_s17 = scalar_lea.vmem (!%p1159_p5), [#allocation2], %s635_s12 }
  0x51   : > { %861 = dma.done.wait (%p1160_p0), %s246_s16, 128  }
  0x52   : > { %863 = vsyncadd (%p1160_p0), %s246_s16, 4294967168  ;;  %p1161_p10 = scmp.eq.s32.totalorder %s951_s25, 0 }
  0x54   : > { %865 = dma.done.wait (%p1161_p10), [#allocation6], 768   ;;  %p1162_p2 = pmov %p1161_p10 }
  0x55   : > { %v892_v0 = vmov 0.0   ;;  %vm893_vm0 = vmmov 0   ;;  %v284_v1 = vlaneseq  ;;  %v748_v3 = vld [vmem:[#allocation5 + $0x10] sm:$0xff]   ;;  %v749_v4 = vld [vmem:[#allocation5] sm:$0xff]   ;;  %v750_v5 = vld [vmem:[#allocation5 + $0x18] sm:$0xff]   ;;  %vm315_vm3 = vcmask 261120  }
  0x56   : > { %867 = vsyncadd (%p1162_p2), [#allocation6], 4294966528  ;;  %663 = vmatprep.subr.bf16.mxu0 %v892_v0  ;;  %671 = vmatprep.subr.bf16.mxu1 %v892_v0  ;;  %v751_v6 = vld [vmem:[#allocation5 + $0x8] sm:$0xff]   ;;  %v283_v7 = vld [vmem:[%s249_s17] sm:$0xff]  ;;  %s651_s18 = sshll.u32 %s951_s25, 7  ;;  %s281_s7 = scalar_lea.vmem [#allocation7], %s635_s12 }
  0x57   : > { %667 = vmatprep.mubr.msk.bf16.mxu0 %vm893_vm0, %v892_v0  ;;  %675 = vmatprep.mubr.msk.bf16.mxu1 %vm893_vm0, %v892_v0  ;;  %v285_v2 = vshrl.u32 %v284_v1, 7  ;;  %v294_v8 = vrot.slane %v283_v7, 7  ;;  %v286_v9 = vrot.slane %v283_v7, 6  ;;  %v752_v12 = vld [vmem:[#allocation5 + $0x20] sm:$0xff]   ;;  %v753_v15 = vld [vmem:[#allocation5 + $0x28] sm:$0xff]   ;;  %v414_v16 = vpack.c.bf16 %v283_v7, %v283_v7  ;;  %s548_s30 = sshll.u32 %s281_s7, 4  ;;  %s1098_s27 = scalar_lea.hbm %s1148_s6, %s651_s18  ;;  %s1100_s30 = int_to_ptr.vmem [resolvable:$true] %s548_s30 }
  0x58   : > { %664 = vmatpush3.bf16.msra.mxu0 %v748_v3  ;;  %672 = vmatpush3.bf16.msra.mxu1 %v749_v4  ;;  %v485_v26 = vld [vmem:[%s1145_s3] sm:$0x1]  ;;  %s535_s29 = scalar_lea.sflag [#allocation4], %s1058_s26  ;;  %s816_s19 = scalar_lea.vmem %s1100_s30, 128 }
  0x59   : > { %665 = vmatprep.subr.bf16.mxu0 %v892_v0  ;;  %vm295_vm1 = vcmp.ge.s32.totalorder %v285_v2, 1  ;;  %673 = vmatprep.subr.bf16.mxu1 %v892_v0  ;;  %vm287_vm2 = vcmp.ge.s32.totalorder %v285_v2, 2  ;;  %v486_v27 = vmul.f32 %v485_v26, %v485_v26  ;;  %v490_v28 = vsub.s32 0, %v285_v2  ;;  %v647_v30 = vld [vmem:[%s1144_s2] ss:$0 sm:$0xff]  ;;  %p817_p1 = scmp.ne.s32.totalorder %s1100_s30, %s816_s19  ;;  %s894_s25 = smov [#allocation7]  }
  0x5a   : > { %v296_v10 = vsel %vm295_vm1, %v294_v8, 0.0  ;;  %v288_v11 = vsel %vm287_vm2, %v286_v9, 0.0  ;;  %v648_v55 = vld [vmem:[%s1146_s4] ss:$0 sm:$0xff]  ;;  %s820_s12 = sshll.u32 %s894_s25, 4  ;;  %s821_s12 = int_to_ptr.vmem [resolvable:$false] %s820_s12 }
  0x5b   : > { %v297_v13 = vpack.c.bf16 %v296_v10, %v296_v10  ;;  %v289_v14 = vpack.c.bf16 %v288_v11, %v288_v11  ;;  %v491_v36 = vrot.slane %v486_v27, %v490_v28  ;;  %v649_v58 = vld [vmem:[%s1147_s5] ss:$0 sm:$0xff]  ;;  %p818_p4 = pnand %p817_p1, %p1013_p12  ;;  %s822_s10 = scalar_lea.vmem %s821_s12, 256 }
  0x5c   : > { %666 = vmatpush3.bf16.msra.mxu0 %v750_v5  ;;  %674 = vmatpush3.bf16.msra.mxu1 %v751_v6  ;;  %p823_p8 = scmp.lt.s32.totalorder %s1100_s30, %s821_s12  ;;  %p824_p13 = scmp.lt.s32.totalorder %s822_s10, %s816_s19 }
  0x5d   : > { %679 = vmatprep.subr.bf16.mxu0 %v892_v0  ;;  %p819_p6 = pneg %p818_p4 }
  0x5e   : > { %p825_p3 = por %p824_p13, %p823_p8 }
  0x5f   : > { %668 = vmatmul.mubr.msk.bf16.vlgmr.msra.gmra.mrb[0].mxu0 %vm315_vm3, %v297_v13  ;;  %676 = vmatmul.mubr.msk.bf16.vlgmr.msra.gmra.mrb[0].mxu1 %vm315_vm3, %v289_v14 }
  0x60   : > { %680 = vmatpush3.bf16.msra.mxu0 %v752_v12  ;;  %683 = vmatprep.mubr.msk.bf16.mxu0 %vm893_vm0, %v892_v0  ;;  %p826_p7 = pnand %p825_p3, %p819_p6 }
  0x61   : > { %681 = vmatprep.subr.bf16.mxu0 %v892_v0 }
  0x64   : > { %682 = vmatpush3.bf16.msra.mxu0 %v753_v15 }
  0x67   : > { %684 = vmatmul.mubr.msk.bf16.vlgmr.msra.gmra.mrb[4].mxu0 %vm315_vm3, %v414_v16 }
 0x132   : > { %v353_v17 = vpop.f32.mrb[0].mxu0  ;;  %v408_v18 = vpop.f32.mrb[0].mxu1 }
 0x133   : > { %v669_v19 = vpop.f32.mrb[1].mxu0  ;;  %v409_v20 = vadd.f32 %v408_v18, %v353_v17  ;;  %v677_v21 = vpop.f32.mrb[1].mxu1 }
 0x134   : > { %v356_v22 = vpop.f32.mrb[2].mxu0  ;;  %v411_v23 = vpop.f32.mrb[2].mxu1 }
 0x135   : > { %v670_v24 = vpop.f32.mrb[3].mxu0  ;;  %v678_v25 = vpop.f32.mrb[3].mxu1 }
 0x13a   : > { %v469_v29 = vpop.f32.mrb[4].mxu0 }
 0x13b   : > { %v475_v31 = vadd.f32 %v469_v29, %v409_v20  ;;  %v685_v32 = vpop.f32.mrb[5].mxu0 }
 0x13c   : > { %v472_v33 = vpop.f32.mrb[6].mxu0 }
 0x13d   : > { %v483_v34 = vadd.f32 %v647_v30, %v475_v31  ;;  %v686_v35 = vpop.f32.mrb[7].mxu0 }
 0x13f   : > { %v484_v37 = vsub.f32 %v283_v7, %v483_v34 }
 0x141   : > { %v493_v38 = vmul.f32 %v491_v36, %v484_v37 }
 0x143   : > { %v494_v39 = vadd.f32 %v493_v38, %v483_v34 }
 0x145   : > { %v495_v40 = vadd.f32 %v494_v39, %v283_v7 }
 0x147   : > { %v496_v41 = vsel %vm315_vm3, %v495_v40, 0.0 }
 0x148   : > { %497 = vadd.xlane.f32.xlu0 %v496_v41 }
 0x1d5   : > { %v498_v42 = vpop.xlane.xlu0 %497 }
 0x1d6   : > { %v500_v43 = vmul.f32 0.03125, %v498_v42 }
 0x1d8   : > { %v501_v44 = vsub.f32 %v495_v40, %v500_v43 }
 0x1da   : > { %v502_v45 = vmul.f32 %v501_v44, %v501_v44  ;;  %v514_v56 = vmul.f32 %v648_v55, %v501_v44 }
 0x1dc   : > { %v503_v46 = vsel %vm315_vm3, %v502_v45, 0.0 }
 0x1dd   : > { %504 = vadd.xlane.f32.xlu0 %v503_v46 }
 0x26a   : > { %v505_v47 = vpop.xlane.xlu0 %504 }
 0x26b   : > { %v506_v48 = vmul.f32 0.03125, %v505_v47 }
 0x26d   : > { %v515_v49 = vadd.f32 1e-12, %v506_v48 }
 0x26f   : > { %754 = vrsqrt.f32 %v515_v49  ;;  %vm518_vm4 = vcmp.eq.f32.partialorder %v515_v49, inf  ;;  %v521_v52 = vand.u32 2147483648, %v515_v49  ;;  %vm520_vm5 = vcmp.eq.f32.partialorder %v515_v49, 0.0 }
 0x279   : > { %v755_v50 = vpop.eup %754 }
 0x27a   : > { %v517_v51 = vmul.f32 %v755_v50, %v515_v49 }
 0x27c   : > { %v519_v53 = vsel %vm518_vm4, %v515_v49, %v517_v51 }
 0x27d   : > { %v522_v54 = vsel %vm520_vm5, %v521_v52, %v519_v53 }
 0x27e   : > { %756 = vrcp.f32 %v522_v54 }
 0x288   : > { %v757_v57 = vpop.eup %756 }
 0x289   : > { %v524_v59 = vmul.f32 %v757_v57, %v514_v56 }
 0x28b   : > { %v532_v60 = vadd.f32 %v649_v58, %v524_v59 }
 0x28d   : > { %533 = vst.msk [vmem:[%s281_s7] sm:$0xff] %vm315_vm3, %v532_v60 }
 0x28e   : > { %829 = shalt.err (!%p826_p7)
}
 0x28f   : > { %s830_s26 = scalar_lea.hbm %s1098_s27, 128  ;;  %s834_s8 = scalar_lea.hbm %s1148_s6, 512 }
 0x290   : > { %p831_p9 = scmp.ne.s32.totalorder %s1098_s27, %s830_s26  ;;  %p835_p0 = scmp.lt.u32.totalorder %s1098_s27, %s1148_s6 }
 0x291   : > { %p836_p10 = scmp.lt.u32.totalorder %s834_s8, %s830_s26  ;;  %p838_p1 = scmp.lt.u32.totalorder %s830_s26, %s1098_s27 }
 0x292   : > { %p832_p11 = pnand %p831_p9, %p1013_p12 }
 0x293   : > { %p837_p2 = por %p836_p10, %p835_p0 }
 0x294   : > { %p833_p5 = pneg %p832_p11 }
 0x295   : > { %p839_p4 = por %p838_p1, %p837_p2 }
 0x297   : > { %p840_p6 = pnand %p839_p4, %p833_p5 }
 0x299   : > { %843 = shalt.err (!%p840_p6)
}
 0x29a   : > { %693 = dma.vmem_to_hbm [thread:$0]  (%p1013_p12), %s1100_s30, 128, %s1098_s27, %s535_s29  }
 0x29b PF: > { %p710_p8 = scmp.ge.s32.totalorder %s886_s24, 2  ;;  %s560_s7 = sand.u32 1, %s874_s21  }
 0x29c   : > { %p1163_p13 = scmp.ne.s32.totalorder %s1153_s28, 0  ;;  %s561_s16 = scalar_lea.sflag [#allocation4], %s560_s7 }
 0x29e   : > { %p704_p3 = pnand %p710_p8, %p1163_p13 }
 0x2a0   : > { %869 = dma.done.wait (!%p704_p3), %s561_s16, 128  }
 0x2a1   : > { %871 = vsyncadd (!%p704_p3), %s561_s16, 4294967168  ;;  %p20_p7 = scmp.ge.s32.totalorder %s983_s9, 6   ;;  %s1164_s21 = smov %s878_s22 }
 0x2a2   : > { %s1165_s22 = smov %s882_s23  ;;  %s1166_s23 = smov %s1009_s13 }
 0x2a3   : > { %s1167_s24 = smov %s983_s9  ;;  %22 = sbr.rel (!%p20_p7) target bundleno = 6 (0x6), region = 95 }
 0x2aa   :  { %566 = vsyncpa [#allocation3], 1 }
 0x2ab   :  { %568 = vsyncpa [#allocation3 + $0x1], 1 }
 0x2ac   :  { %569 = vsyncpa [#allocation6], 1 }
 0x2ad   :  { %570 = vsyncpa [#allocation4], 1 }
 0x2ae   :  { %572 = vsyncpa [#allocation4 + $0x1], 1 }

</bundles_post_ra>
